<compile_context>
chip_gen: v6e
topology: v6e:2x2x1
jax: 0.10.0
libtpu: 0.0.40
codegen_flags: <defaults>
</compile_context>

<pallas_src>
import math
import functools

import jax
import jax.numpy as jnp
from jax.experimental import pallas as pl
from jax.experimental.pallas import tpu as pltpu

LN_EPS = 1e-5
ROTARY_BASE = 10000.0
NEG_INF = -1e30     # finite mask value: safe even for fully-masked entries


# ----------------------------- helpers -----------------------------

def _sublane_align(dtype):
    """Sublane quantum for the activation dtype (8 rows for 4-byte, 16 for 2-byte, ...)."""
    return {4: 8, 2: 16, 1: 32}.get(jnp.dtype(dtype).itemsize, 8)


def _pick_tile(dim, target, align):
    """Largest block size <= target that divides dim and is a multiple of align.
    Falls back to the full dim (always a legal block)."""
    if dim <= target:
        return dim
    t = (target // align) * align
    while t >= align:
        if dim % t == 0:
            return t
        t -= align
    return dim


def _pick_head_group(n_head, head_dim):
    """Pack heads into groups so the packed feature dim G*head_dim is as close to a full
    128-lane vreg as possible (lane-dense HBM blocks)."""
    best = 1
    for g in range(1, n_head + 1):
        if n_head % g == 0 and g * head_dim <= 128:
            best = g
    return best


def _rotary_tables(S, D, H):
    """Expanded (S, E) cos table and sign-folded sin table (f32) tiled across heads, so
    interleaved rotary is:  x * cos + x_pairswapped * sin_signed."""
    inv_freq = 1.0 / (ROTARY_BASE ** (jnp.arange(0, D, 2, dtype=jnp.float32) / D))
    t = jnp.arange(S, dtype=jnp.float32)
    freqs = jnp.outer(t, inv_freq)                          # (S, D/2)
    cos = jnp.repeat(jnp.cos(freqs), 2, axis=-1)            # (S, D)
    sin = jnp.repeat(jnp.sin(freqs), 2, axis=-1)            # (S, D)
    sign = jnp.where(jnp.arange(D) % 2 == 0, -1.0, 1.0)     # -sin on even lanes, +sin on odd
    sin_signed = sin * sign[None, :]
    return jnp.tile(cos, (1, H)), jnp.tile(sin_signed, (1, H))   # (S, E) each, f32


# ----------------------------- Pallas kernels -----------------------------

def ln_qkv_rope_kernel(x_ref, w_ref, b_ref, cos_ref, sin_ref,
                       q_ref, k_ref, v_ref, *, n_embd):
    """Fused LayerNorm(no affine) + fused QKV projection (+bias) + interleaved rotary.

    Grid: (B, S/TS).  LN is computed ONCE per row tile; the projection is a single
    (ts,E)@(E,5E) matmul whose columns are [Wq*s | Wk | Wv | Wq_swapped*s | Wk_swapped],
    so rotary is just two elementwise FMAs (pair-swap folded into weights, 1/sqrt(D)
    folded into the q columns).  Outputs are head-group-major (B, HG, S, GD)."""
    E = n_embd
    x = x_ref[0].astype(jnp.float32)                       # (TS, E)
    mu = jnp.mean(x, axis=-1, keepdims=True)
    var = jnp.mean((x - mu) ** 2, axis=-1, keepdims=True)
    xn = ((x - mu) * jax.lax.rsqrt(var + LN_EPS)).astype(w_ref.dtype)

    proj = jnp.dot(xn, w_ref[...], preferred_element_type=jnp.float32)   # (TS, 5E) f32
    proj = proj + b_ref[...].astype(jnp.float32)

    q = proj[:, 0 * E:1 * E]
    k = proj[:, 1 * E:2 * E]
    v = proj[:, 2 * E:3 * E]
    q_sw = proj[:, 3 * E:4 * E]
    k_sw = proj[:, 4 * E:5 * E]

    cos = cos_ref[...]                                     # (TS, E) f32
    sin = sin_ref[...]                                     # (TS, E) f32, sign-folded
    q = q * cos + q_sw * sin                               # interleaved rope (scale pre-folded)
    k = k * cos + k_sw * sin

    HG, GD = q_ref.shape[1], q_ref.shape[3]
    for g in range(HG):                                    # lane-dense per-group stores
        cols = slice(g * GD, (g + 1) * GD)
        q_ref[0, g] = q[:, cols].astype(q_ref.dtype)
        k_ref[0, g] = k[:, cols].astype(k_ref.dtype)
        v_ref[0, g] = v[:, cols].astype(v_ref.dtype)


def flash_attn_kernel(q_ref, k_ref, v_ref, o_ref, *, tk, head_dim):
    """Causal flash attention over one (batch, head-group, q-tile).

    Grid: (B, HG, S/TQ) — all parallel.  k/v are full-sequence resident VMEM blocks; the
    kv axis is an in-kernel fori_loop with an EXACT causal trip count, so no grid-step
    overhead per kv tile and no wasted work on the masked upper triangle.  The MXU sees
    native-dtype operands; the softmax scale was folded into W_q upstream.  The packed
    output (TQ, GD) is written as one lane-dense block of the (B, S, E) slab."""
    qi = pl.program_id(2)
    tq, GD = q_ref.shape[2], q_ref.shape[3]
    G = GD // head_dim
    q_start = qi * tq
    n_kv = ((qi + 1) * tq + tk - 1) // tk                   # exact number of causal kv tiles

    q_all = q_ref[0, 0]                                     # (TQ, GD), native dtype
    q_heads = [q_all[:, h * head_dim:(h + 1) * head_dim] for h in range(G)]

    def body(j, carry):
        start = pl.multiple_of(j * tk, tk)
        k_t = k_ref[0, 0, pl.ds(start, tk), :]              # (TK, GD)
        v_t = v_ref[0, 0, pl.ds(start, tk), :]
        qpos = q_start + jax.lax.broadcasted_iota(jnp.int32, (tq, tk), 0)
        kpos = start + jax.lax.broadcasted_iota(jnp.int32, (tq, tk), 1)
        causal = qpos >= kpos
        new = []
        for h in range(G):
            d0, d1 = h * head_dim, (h + 1) * head_dim
            m_p, l_p, a_p = carry[h]
            # contraction over D directly (no k.T materialization), native dtype into MXU
            s = jax.lax.dot_general(q_heads[h], k_t[:, d0:d1],
                                    (((1,), (1,)), ((), ())),
                                    preferred_element_type=jnp.float32)   # (TQ, TK)
            s = jnp.where(causal, s, NEG_INF)
            m_n = jnp.maximum(m_p, jnp.max(s, axis=-1, keepdims=True))
            alpha = jnp.exp(m_p - m_n)
            p = jnp.exp(s - m_n)
            l_n = alpha * l_p + jnp.sum(p, axis=-1, keepdims=True)
            a_n = alpha * a_p + jax.lax.dot_general(p.astype(v_t.dtype), v_t[:, d0:d1],
                                                    (((1,), (0,)), ((), ())),
                                                    preferred_element_type=jnp.float32)
            new.append((m_n, l_n, a_n))
        return tuple(new)

    init = tuple((jnp.full((tq, 1), NEG_INF, jnp.float32),
                  jnp.zeros((tq, 1), jnp.float32),
                  jnp.zeros((tq, head_dim), jnp.float32)) for _ in range(G))
    final = jax.lax.fori_loop(0, n_kv, body, init)

    parts = [acc * pl.reciprocal(l, approx=True) for (_, l, acc) in final]
    out = parts[0] if G == 1 else jnp.concatenate(parts, axis=-1)        # (TQ, GD)
    o_ref[0] = out.astype(o_ref.dtype)


def out_proj_residual_kernel(a_ref, x_ref, w_ref, b_ref, y_ref):
    """Attention-output projection + bias + residual as one full-K matmul.
    Grid: (N/TM,).  w_out/b_out use constant index maps -> DMA'd once, stay resident."""
    y = jnp.dot(a_ref[...], w_ref[...], preferred_element_type=jnp.float32)   # (TM, E)
    y_ref[...] = (y + b_ref[...].astype(jnp.float32)
                  + x_ref[...].astype(jnp.float32)).astype(y_ref.dtype)


def swiglu_ln_kernel(x_ref, wg_ref, wv_ref, wp_ref, y_ref, xn_sc, acc_sc):
    """Fused LayerNorm(no affine) + SwiGLU MLP + residual, streaming the hidden dim as a
    reduction grid axis.  Grid: (N/TM, E/TKH) with the hidden axis 'arbitrary'.
    xn is computed ONCE per row tile (kh==0) into VMEM scratch and reused."""
    kh = pl.program_id(1)

    @pl.when(kh == 0)
    def _init():
        x = x_ref[...].astype(jnp.float32)
        mu = jnp.mean(x, axis=-1, keepdims=True)
        var = jnp.mean((x - mu) ** 2, axis=-1, keepdims=True)
        xn_sc[...] = ((x - mu) * jax.lax.rsqrt(var + LN_EPS)).astype(xn_sc.dtype)
        acc_sc[...] = jnp.zeros_like(acc_sc)

    xn = xn_sc[...]                                                        # native dtype
    g = jnp.dot(xn, wg_ref[...], preferred_element_type=jnp.float32)      # (TM, TKH)
    v = jnp.dot(xn, wv_ref[...], preferred_element_type=jnp.float32)      # (TM, TKH)
    hact = (g * jax.nn.sigmoid(g)) * v                                    # silu(g) * v
    acc_sc[...] += jnp.dot(hact.astype(wp_ref.dtype), wp_ref[...],
                           preferred_element_type=jnp.float32)            # (TM, E)

    @pl.when(kh == pl.num_programs(1) - 1)
    def _finalize():
        y_ref[...] = (acc_sc[...] + x_ref[...].astype(jnp.float32)).astype(y_ref.dtype)


# --------------------------- pallas_call wrappers --------------------------

def _ln_qkv_rope(x, wqkv, bqkv, cos, sin_signed, *, ts, num_groups, group_dim):
    B, S, E = x.shape
    HG, GD = num_groups, group_dim
    out_sh = jax.ShapeDtypeStruct((B, HG, S, GD), x.dtype)
    out_spec = pl.BlockSpec((1, HG, ts, GD), lambda b, si: (b, 0, si, 0))
    kernel = functools.partial(ln_qkv_rope_kernel, n_embd=E)
    return pl.pallas_call(
        kernel,
        grid=(B, S // ts),
        in_specs=[
            pl.BlockSpec((1, ts, E), lambda b, si: (b, si, 0)),
            pl.BlockSpec((E, 5 * E), lambda b, si: (0, 0)),      # resident across grid
            pl.BlockSpec((1, 5 * E), lambda b, si: (0, 0)),
            pl.BlockSpec((ts, E), lambda b, si: (si, 0)),
            pl.BlockSpec((ts, E), lambda b, si: (si, 0)),
        ],
        out_specs=(out_spec, out_spec, out_spec),
        out_shape=(out_sh, out_sh, out_sh),
        compiler_params=pltpu.CompilerParams(
            dimension_semantics=("parallel", "parallel")),
    )(x, wqkv, bqkv, cos, sin_signed)


def _flash_causal_attention(q, k, v, *, tq, tk, head_dim):
    B, HG, S, GD = q.shape
    E = HG * GD
    kernel = functools.partial(flash_attn_kernel, tk=tk, head_dim=head_dim)
    return pl.pallas_call(
        kernel,
        grid=(B, HG, S // tq),
        in_specs=[
            pl.BlockSpec((1, 1, tq, GD), lambda b, g, qi: (b, g, qi, 0)),
            pl.BlockSpec((1, 1, S, GD), lambda b, g, qi: (b, g, 0, 0)),   # full-S resident
            pl.BlockSpec((1, 1, S, GD), lambda b, g, qi: (b, g, 0, 0)),
        ],
        # write straight into the lane-dense (B, S, E) slab at column block g
        out_specs=pl.BlockSpec((1, tq, GD), lambda b, g, qi: (b, qi, g)),
        out_shape=jax.ShapeDtypeStruct((B, S, E), q.dtype),
        compiler_params=pltpu.CompilerParams(
            dimension_semantics=("parallel", "parallel", "parallel")),
    )(q, k, v)


def _out_proj_residual(attn2d, x2d, w_out, b_out, *, tm):
    N, E = x2d.shape
    return pl.pallas_call(
        out_proj_residual_kernel,
        grid=(N // tm,),
        in_specs=[
            pl.BlockSpec((tm, E), lambda i: (i, 0)),
            pl.BlockSpec((tm, E), lambda i: (i, 0)),
            pl.BlockSpec((E, E), lambda i: (0, 0)),
            pl.BlockSpec((1, E), lambda i: (0, 0)),
        ],
        out_specs=pl.BlockSpec((tm, E), lambda i: (i, 0)),
        out_shape=jax.ShapeDtypeStruct((N, E), x2d.dtype),
        compiler_params=pltpu.CompilerParams(dimension_semantics=("parallel",)),
    )(attn2d, x2d, w_out, b_out)


def _swiglu_block(x2, wg, wv, wp, *, tm, tkh):
    N, E = x2.shape
    return pl.pallas_call(
        swiglu_ln_kernel,
        grid=(N // tm, E // tkh),
        in_specs=[
            pl.BlockSpec((tm, E), lambda i, kh: (i, 0)),
            pl.BlockSpec((E, tkh), lambda i, kh: (0, kh)),
            pl.BlockSpec((E, tkh), lambda i, kh: (0, kh)),
            pl.BlockSpec((tkh, E), lambda i, kh: (kh, 0)),
        ],
        out_specs=pl.BlockSpec((tm, E), lambda i, kh: (i, 0)),
        out_shape=jax.ShapeDtypeStruct((N, E), x2.dtype),
        scratch_shapes=[pltpu.VMEM((tm, E), x2.dtype),        # cached xn (native dtype -> MXU)
                        pltpu.VMEM((tm, E), jnp.float32)],    # f32 accumulator
        compiler_params=pltpu.CompilerParams(
            dimension_semantics=("parallel", "arbitrary")),
    )(x2, wg, wv, wp)


# ------------------------------ Full forward -------------------------------

def mha_block_forward(params, x, *, row_tile=256, q_tile=128, kv_tile=256, hidden_tile=512):
    """kv_tile=256 targets the 256-wide MXU on v6e/v7x; use kv_tile=128 on v5e."""
    B, S, E = x.shape
    H = params["n_head"]
    D = E // H
    N = B * S

    align = _sublane_align(x.dtype)
    ts = _pick_tile(S, row_tile, align)        # sequence row tile for LN+QKV
    tq = _pick_tile(S, q_tile, align)
    tk = _pick_tile(S, kv_tile, align)
    tm = _pick_tile(N, row_tile, align)        # row tile for out-proj / MLP
    tkh = _pick_tile(E, hidden_tile, 128)      # hidden (reduction) tile for SwiGLU

    # head packing: GD = G*D lanes per block (128 when possible)
    G = _pick_head_group(H, D)
    HG, GD = H // G, G * D
    if HG > 1 and GD % 128 != 0:
        G, HG, GD = H, 1, E                    # fallback: single group (GD == E, always legal)

    # ---- host-side weight packing (done once; folds scale + rotary pair-swap) ----
    scale = 1.0 / math.sqrt(D)
    wq = jnp.transpose(params["w_q"], (1, 0, 2)).reshape(E, E) * scale    # scale folded here
    wk = jnp.transpose(params["w_k"], (1, 0, 2)).reshape(E, E)
    wv = jnp.transpose(params["w_v"], (1, 0, 2)).reshape(E, E)
    bq = params["b_q"][:, 0, :].reshape(E) * scale
    bk = params["b_k"][:, 0, :].reshape(E)
    bv = params["b_v"][:, 0, :].reshape(E)
    perm = jnp.arange(E) ^ 1                                              # interleaved pair swap
    wqkv = jnp.concatenate([wq, wk, wv, wq[:, perm], wk[:, perm]], axis=1)   # (E, 5E)
    bqkv = jnp.concatenate([bq, bk, bv, bq[perm], bk[perm]])[None, :]        # (1, 5E)
    w_out = params["w_out"].reshape(E, E)                                    # (H*D, E)
    cos, sin_signed = _rotary_tables(S, D, H)                                # (S, E) f32

    # LN1 + fused QKV(+bias) + rotary, head-group-major outputs (B, HG, S, GD)
    q, k, v = _ln_qkv_rope(x, wqkv, bqkv, cos, sin_signed,
                           ts=ts, num_groups=HG, group_dim=GD)

    # causal flash attention, writes directly into a (B, S, E) slab
    attn = _flash_causal_attention(q, k, v, tq=tq, tk=tk, head_dim=D)

    # out projection + bias + residual (single K=E contraction)
    y = _out_proj_residual(attn.reshape(N, E), x.reshape(N, E),
                           w_out, params["b_out"], tm=tm)                    # (N, E)

    # LN2 + SwiGLU + residual
    out = _swiglu_block(y, params["w_gates"], params["w_values"], params["w_proj"],
                        tm=tm, tkh=tkh)
    return out.reshape(B, S, E)


# ---------------------------- Pure-JAX reference ----------------------------

def _ln_ref(x):
    mu = jnp.mean(x, axis=-1, keepdims=True)
    var = jnp.mean((x - mu) ** 2, axis=-1, keepdims=True)
    return (x - mu) * jax.lax.rsqrt(var + LN_EPS)


def _rotary_cos_sin_ref(S, D):
    inv_freq = 1.0 / (ROTARY_BASE ** (jnp.arange(0, D, 2, dtype=jnp.float32) / D))
    t = jnp.arange(S, dtype=jnp.float32)
    freqs = jnp.outer(t, inv_freq)
    return jnp.cos(freqs), jnp.sin(freqs)


def _apply_rotary_interleaved_ref(x, cos, sin):
    x1 = x[..., ::2]
    x2 = x[..., 1::2]
    c = cos[None, :, None, :]
    s = sin[None, :, None, :]
    o1 = x1 * c - x2 * s
    o2 = x1 * s + x2 * c
    return jnp.stack([o1, o2], axis=-1).reshape(x.shape)


def mha_block_reference(params, x):
    B, S, E = x.shape
    H = params["n_head"]
    D = E // H

    xn = _ln_ref(x)
    q = jnp.einsum("bse,hed->bshd", xn, params["w_q"]) + params["b_q"][:, 0][None, None]
    k = jnp.einsum("bse,hed->bshd", xn, params["w_k"]) + params["b_k"][:, 0][None, None]
    v = jnp.einsum("bse,hed->bshd", xn, params["w_v"]) + params["b_v"][:, 0][None, None]

    cos, sin = _rotary_cos_sin_ref(S, D)
    q = _apply_rotary_interleaved_ref(q, cos, sin)
    k = _apply_rotary_interleaved_ref(k, cos, sin)

    s = jnp.einsum("bqhd,bkhd->bhqk", q, k) / math.sqrt(D)
    ii = jnp.arange(S)[:, None]
    jj = jnp.arange(S)[None, :]
    s = jnp.where(jj <= ii, s, -jnp.inf)
    p = jax.nn.softmax(s, axis=-1)
    o = jnp.einsum("bhqk,bkhd->bqhd", p, v)                                   # (B,S,H,D)
    y = jnp.einsum("bqhd,hde->bqe", o, params["w_out"]) + params["b_out"][0]
    x = y + x

    residual = x
    xn2 = _ln_ref(x)
    g = xn2 @ params["w_gates"]
    val = xn2 @ params["w_values"]
    return (jax.nn.silu(g) * val) @ params["w_proj"] + residual


# --------------------------------- Main -------------------------------------

def make_params(key, n_embd, n_head):
    E, H = n_embd, n_head
    D = E // H
    ks = jax.random.split(key, 11)
    s = 0.02
    return {
        "n_head": H,
        # per-head QKV projection weights/biases (head-major)
        "w_q": s * jax.random.normal(ks[0], (H, E, D), jnp.float32),
        "w_k": s * jax.random.normal(ks[1], (H, E, D), jnp.float32),
        "w_v": s * jax.random.normal(ks[2], (H, E, D), jnp.float32),
        "b_q": s * jax.random.normal(ks[3], (H, 1, D), jnp.float32),
        "b_k": s * jax.random.normal(ks[4], (H, 1, D), jnp.float32),
        "b_v": s * jax.random.normal(ks[5], (H, 1, D), jnp.float32),
        # out projection stored head-major: y = concat_h(o_h) @ reshape(w_out, (E, E))
        "w_out": s * jax.random.normal(ks[6], (H, D, E), jnp.float32),
        "b_out": s * jax.random.normal(ks[7], (1, E), jnp.float32),
        "w_gates": s * jax.random.normal(ks[8], (E, E), jnp.float32),
        "w_values": s * jax.random.normal(ks[9], (E, E), jnp.float32),
        "w_proj": s * jax.random.normal(ks[10], (E, E), jnp.float32),
    }


if __name__ == "__main__":
    def run_case(B, S, E, H, seed):
        key = jax.random.PRNGKey(seed)
        kp, kx = jax.random.split(key)
        params = make_params(kp, E, H)
        x = jax.random.normal(kx, (B, S, E), jnp.float32)

        out = jax.block_until_ready(mha_block_forward(params, x))
        ref = jax.block_until_ready(mha_block_reference(params, x))

        assert out.shape == (B, S, E)
        max_err = float(jnp.max(jnp.abs(out - ref)))
        # 2e-3 tolerance: approx EUP reciprocal in the attention finalize + reduced-precision
        # default-XLA matmuls in the reference.
        assert jnp.allclose(out, ref, atol=2e-3, rtol=2e-3), \
            f"Pallas output mismatch vs JAX reference (max abs err {max_err})"

    # tiny config (blocks == full arrays, single head group)
    run_case(B=2, S=8, E=32, H=4, seed=0)
    # moderately sized config: exercises multi-tile grids, 2-head (128-lane) packing,
    # the in-kernel causal kv loop and the direct (B,S,E) attention-output slab
    run_case(B=2, S=256, E=256, H=4, seed=1)

    print("KERNEL_OK")
</pallas_src>

<mosaic_0001>
module attributes {stable_mosaic.version = 11 : i64} {
  func.func @ln_qkv_rope_kernel(%arg0: i32, %arg1: i32, %arg2: memref<1x8x32xf32, #tpu.memory_space<vmem>>, %arg3: memref<32x160xf32, #tpu.memory_space<vmem>>, %arg4: memref<1x160xf32, #tpu.memory_space<vmem>>, %arg5: memref<8x32xf32, #tpu.memory_space<vmem>>, %arg6: memref<8x32xf32, #tpu.memory_space<vmem>>, %arg7: memref<1x1x8x32xf32, #tpu.memory_space<vmem>>, %arg8: memref<1x1x8x32xf32, #tpu.memory_space<vmem>>, %arg9: memref<1x1x8x32xf32, #tpu.memory_space<vmem>>) attributes {dimension_semantics = [#tpu.dimension_semantics<parallel>, #tpu.dimension_semantics<parallel>], iteration_bounds = array<i64: 2, 1>, scalar_prefetch = 0 : i64, scratch_operands = 0 : i64, tpu.core_type = #tpu.core_type<tc>, window_params = [{transform_indices = @transform_0, window_bounds = array<i64: 1, 8, 32>}, {pipeline_mode = #tpu.pipeline_mode<synchronous>, transform_indices = @transform_1, window_bounds = array<i64: 32, 160>}, {pipeline_mode = #tpu.pipeline_mode<synchronous>, transform_indices = @transform_2, window_bounds = array<i64: 1, 160>}, {transform_indices = @transform_3, window_bounds = array<i64: 8, 32>}, {transform_indices = @transform_4, window_bounds = array<i64: 8, 32>}, {transform_indices = @transform_5, window_bounds = array<i64: 1, 1, 8, 32>}, {transform_indices = @transform_6, window_bounds = array<i64: 1, 1, 8, 32>}, {transform_indices = @transform_7, window_bounds = array<i64: 1, 1, 8, 32>}]} {
    %c0 = arith.constant 0 : index
    %c0_0 = arith.constant 0 : index
    %c0_1 = arith.constant 0 : index
    %0 = vector.load %arg2[%c0, %c0_0, %c0_1] : memref<1x8x32xf32, #tpu.memory_space<vmem>>, vector<1x8x32xf32>
    %1 = vector.shape_cast %0 : vector<1x8x32xf32> to vector<8x32xf32>
    %cst = arith.constant dense<0.000000e+00> : vector<8xf32>
    %2 = vector.multi_reduction <add>, %1, %cst [1] : vector<8x32xf32> to vector<8xf32>
    %3 = vector.shape_cast %2 : vector<8xf32> to vector<8x1xf32>
    %cst_2 = arith.constant 3.200000e+01 : f32
    %4 = vector.broadcast %cst_2 : f32 to vector<8x1xf32>
    %5 = arith.divf %3, %4 : vector<8x1xf32>
    %6 = vector.broadcast %5 : vector<8x1xf32> to vector<8x32xf32>
    %7 = arith.subf %1, %6 : vector<8x32xf32>
    %8 = arith.mulf %7, %7 : vector<8x32xf32>
    %cst_3 = arith.constant dense<0.000000e+00> : vector<8xf32>
    %9 = vector.multi_reduction <add>, %8, %cst_3 [1] : vector<8x32xf32> to vector<8xf32>
    %10 = vector.shape_cast %9 : vector<8xf32> to vector<8x1xf32>
    %cst_4 = arith.constant 3.200000e+01 : f32
    %11 = vector.broadcast %cst_4 : f32 to vector<8x1xf32>
    %12 = arith.divf %10, %11 : vector<8x1xf32>
    %13 = vector.broadcast %5 : vector<8x1xf32> to vector<8x32xf32>
    %14 = arith.subf %1, %13 : vector<8x32xf32>
    %cst_5 = arith.constant 9.99999974E-6 : f32
    %15 = vector.broadcast %cst_5 : f32 to vector<8x1xf32>
    %16 = arith.addf %12, %15 : vector<8x1xf32>
    %17 = math.rsqrt %16 : vector<8x1xf32>
    %18 = vector.broadcast %17 : vector<8x1xf32> to vector<8x32xf32>
    %19 = arith.mulf %14, %18 : vector<8x32xf32>
    %c0_6 = arith.constant 0 : index
    %c0_7 = arith.constant 0 : index
    %20 = vector.load %arg3[%c0_6, %c0_7] : memref<32x160xf32, #tpu.memory_space<vmem>>, vector<32x160xf32>
    %cst_8 = arith.constant dense<0.000000e+00> : vector<8x160xf32>
    %21 = tpu.matmul %19, %20, %cst_8 {dimension_numbers = #tpu.dot_dimension_numbers<[1], [0], [0], [1], [0, 0, 1, 1], [], []>} : vector<8x32xf32>, vector<32x160xf32>, vector<8x160xf32> -> vector<8x160xf32>
    %c0_9 = arith.constant 0 : index
    %c0_10 = arith.constant 0 : index
    %22 = vector.load %arg4[%c0_9, %c0_10] : memref<1x160xf32, #tpu.memory_space<vmem>>, vector<1x160xf32>
    %23 = vector.broadcast %22 : vector<1x160xf32> to vector<8x160xf32>
    %24 = arith.addf %21, %23 : vector<8x160xf32>
    %25 = vector.extract_strided_slice %24 {offsets = [0, 0], sizes = [8, 32], strides = [1, 1]} : vector<8x160xf32> to vector<8x32xf32>
    %26 = vector.extract_strided_slice %24 {offsets = [0, 32], sizes = [8, 32], strides = [1, 1]} : vector<8x160xf32> to vector<8x32xf32>
    %27 = vector.extract_strided_slice %24 {offsets = [0, 64], sizes = [8, 32], strides = [1, 1]} : vector<8x160xf32> to vector<8x32xf32>
    %28 = vector.extract_strided_slice %24 {offsets = [0, 96], sizes = [8, 32], strides = [1, 1]} : vector<8x160xf32> to vector<8x32xf32>
    %29 = vector.extract_strided_slice %24 {offsets = [0, 128], sizes = [8, 32], strides = [1, 1]} : vector<8x160xf32> to vector<8x32xf32>
    %c0_11 = arith.constant 0 : index
    %c0_12 = arith.constant 0 : index
    %30 = vector.load %arg5[%c0_11, %c0_12] : memref<8x32xf32, #tpu.memory_space<vmem>>, vector<8x32xf32>
    %c0_13 = arith.constant 0 : index
    %c0_14 = arith.constant 0 : index
    %31 = vector.load %arg6[%c0_13, %c0_14] : memref<8x32xf32, #tpu.memory_space<vmem>>, vector<8x32xf32>
    %32 = arith.mulf %25, %30 : vector<8x32xf32>
    %33 = arith.mulf %28, %31 : vector<8x32xf32>
    %34 = arith.addf %32, %33 : vector<8x32xf32>
    %35 = arith.mulf %26, %30 : vector<8x32xf32>
    %36 = arith.mulf %29, %31 : vector<8x32xf32>
    %37 = arith.addf %35, %36 : vector<8x32xf32>
    %c0_15 = arith.constant 0 : index
    %c0_16 = arith.constant 0 : index
    %c0_17 = arith.constant 0 : index
    %c0_18 = arith.constant 0 : index
    %38 = vector.load %arg7[%c0_15, %c0_16, %c0_17, %c0_18] : memref<1x1x8x32xf32, #tpu.memory_space<vmem>>, vector<1x1x8x32xf32>
    %39 = vector.shape_cast %38 : vector<1x1x8x32xf32> to vector<8x32xf32>
    %40 = vector.shape_cast %34 : vector<8x32xf32> to vector<1x1x8x32xf32>
    tpu.vector_store %arg7[%c0_15, %c0_16, %c0_17, %c0_18], %40 {strides = array<i32>} : memref<1x1x8x32xf32, #tpu.memory_space<vmem>>, vector<1x1x8x32xf32>,
    %c0_19 = arith.constant 0 : index
    %c0_20 = arith.constant 0 : index
    %c0_21 = arith.constant 0 : index
    %c0_22 = arith.constant 0 : index
    %41 = vector.load %arg8[%c0_19, %c0_20, %c0_21, %c0_22] : memref<1x1x8x32xf32, #tpu.memory_space<vmem>>, vector<1x1x8x32xf32>
    %42 = vector.shape_cast %41 : vector<1x1x8x32xf32> to vector<8x32xf32>
    %43 = vector.shape_cast %37 : vector<8x32xf32> to vector<1x1x8x32xf32>
    tpu.vector_store %arg8[%c0_19, %c0_20, %c0_21, %c0_22], %43 {strides = array<i32>} : memref<1x1x8x32xf32, #tpu.memory_space<vmem>>, vector<1x1x8x32xf32>,
    %c0_23 = arith.constant 0 : index
    %c0_24 = arith.constant 0 : index
    %c0_25 = arith.constant 0 : index
    %c0_26 = arith.constant 0 : index
    %44 = vector.load %arg9[%c0_23, %c0_24, %c0_25, %c0_26] : memref<1x1x8x32xf32, #tpu.memory_space<vmem>>, vector<1x1x8x32xf32>
    %45 = vector.shape_cast %44 : vector<1x1x8x32xf32> to vector<8x32xf32>
    %46 = vector.shape_cast %27 : vector<8x32xf32> to vector<1x1x8x32xf32>
    tpu.vector_store %arg9[%c0_23, %c0_24, %c0_25, %c0_26], %46 {strides = array<i32>} : memref<1x1x8x32xf32, #tpu.memory_space<vmem>>, vector<1x1x8x32xf32>,
    return
  }
  func.func @transform_0(%arg0: i32, %arg1: i32) -> (i32, i32, i32) {
    %c0_i32 = arith.constant 0 : i32
    %c0_i32_0 = arith.constant 0 : i32
    return %arg0, %arg1, %c0_i32 : i32, i32, i32
  }
  func.func @transform_1(%arg0: i32, %arg1: i32) -> (i32, i32) {
    %c0_i32 = arith.constant 0 : i32
    %c0_i32_0 = arith.constant 0 : i32
    %c0_i32_1 = arith.constant 0 : i32
    return %c0_i32, %c0_i32_0 : i32, i32
  }
  func.func @transform_2(%arg0: i32, %arg1: i32) -> (i32, i32) {
    %c0_i32 = arith.constant 0 : i32
    %c0_i32_0 = arith.constant 0 : i32
    %c0_i32_1 = arith.constant 0 : i32
    return %c0_i32, %c0_i32_0 : i32, i32
  }
  func.func @transform_3(%arg0: i32, %arg1: i32) -> (i32, i32) {
    %c0_i32 = arith.constant 0 : i32
    %c0_i32_0 = arith.constant 0 : i32
    return %arg1, %c0_i32 : i32, i32
  }
  func.func @transform_4(%arg0: i32, %arg1: i32) -> (i32, i32) {
    %c0_i32 = arith.constant 0 : i32
    %c0_i32_0 = arith.constant 0 : i32
    return %arg1, %c0_i32 : i32, i32
  }
  func.func @transform_5(%arg0: i32, %arg1: i32) -> (i32, i32, i32, i32) {
    %c0_i32 = arith.constant 0 : i32
    %c0_i32_0 = arith.constant 0 : i32
    %c0_i32_1 = arith.constant 0 : i32
    return %arg0, %c0_i32, %arg1, %c0_i32_0 : i32, i32, i32, i32
  }
  func.func @transform_6(%arg0: i32, %arg1: i32) -> (i32, i32, i32, i32) {
    %c0_i32 = arith.constant 0 : i32
    %c0_i32_0 = arith.constant 0 : i32
    %c0_i32_1 = arith.constant 0 : i32
    return %arg0, %c0_i32, %arg1, %c0_i32_0 : i32, i32, i32, i32
  }
  func.func @transform_7(%arg0: i32, %arg1: i32) -> (i32, i32, i32, i32) {
    %c0_i32 = arith.constant 0 : i32
    %c0_i32_0 = arith.constant 0 : i32
    %c0_i32_1 = arith.constant 0 : i32
    return %arg0, %c0_i32, %arg1, %c0_i32_0 : i32, i32, i32, i32
  }
}

</mosaic_0001>

<bundles_post_ra>
// kernel: tpu_custom_call.1
= control target key start
LH: loop header
LB: loop body
LE: loop exit
PB: predicated region body
PF: predicated region fallthrough
CT: control target
= control target key end

     0   :  { %s1474_s0 = inlined_call_operand.hbm [shape: f32[2,8,32], index: 0, kind: input, shape index: {}]   ;;  %s1475_s1 = inlined_call_operand.hbm [shape: f32[32,160], index: 1, kind: input, shape index: {}]   ;;  %s1476_s2 = inlined_call_operand.vmem [shape: f32[1,160], index: 2, kind: input, shape index: {}]   ;;  %s1477_s3 = inlined_call_operand.hbm [shape: f32[8,32], index: 3, kind: input, shape index: {}]   ;;  %s1478_s4 = inlined_call_operand.hbm [shape: f32[8,32], index: 4, kind: input, shape index: {}]   ;;  %s1479_s5 = inlined_call_operand.hbm [shape: f32[2,1,8,32], index: 5, kind: output, shape index: {0}]   ;;  %s1480_s6 = inlined_call_operand.hbm [shape: f32[2,1,8,32], index: 6, kind: output, shape index: {1}]   ;;  %s1481_s7 = inlined_call_operand.hbm [shape: f32[2,1,8,32], index: 7, kind: output, shape index: {2}]  }
   0x1   :  { %1485 = sst [smem:[#allocation19_spill]] %s1475_s1 }
   0x2   :  { %1486 = sst [smem:[#allocation20_spill]] %s1477_s3 }
   0x3   :  { %1487 = sst [smem:[#allocation21_spill]] %s1478_s4 }
   0x4   :  { %13 = vsyncpa [#allocation3], 0 }
   0x5   :  { %15 = vsyncpa [#allocation3 + $0x1], 0 }
   0x6   :  { %16 = vsyncpa [#allocation6], 0 }
   0x7   :  { %17 = vsyncpa [#allocation9], 0 }
   0x8   :  { %18 = vsyncpa [#allocation4], 0 }
   0x9   :  { %20 = vsyncpa [#allocation4 + $0x1], 0 }
   0xa   :  { %21 = vsyncpa [#allocation12], 0 }
   0xb   :  { %23 = vsyncpa [#allocation12 + $0x1], 0  ;;  %s1203_s24 = smov 0   ;;  %s1205_s25 = smov 0  }
   0xc   :  { %s1207_s26 = smov 0   ;;  %s1209_s27 = smov 0  }
   0xd   :  { %s1211_s28 = smov 0   ;;  %s1213_s29 = smov 0  }
   0xe LB: > { %s1234_s30 = sadd.s32 4294967295, %s1148_s29   ;;  %s1484_s8 = sadd.s32 4294967294, %s1148_s29   ;;  %s1148_s29 = sphi %s1213_s29, %s29_s29   ;;  %s1144_s28 = sphi %s1211_s28, %s1510_s28   ;;  %s1140_s27 = sphi %s1209_s27, %s1509_s27   ;;  %s1136_s26 = sphi %s1207_s26, %s1508_s26   ;;  %s1132_s25 = sphi %s1205_s25, %s1507_s25   ;;  %s1128_s24 = sphi %s1203_s24, %s1506_s24  }
   0xf   : > { %p63_p0 = scmp.ne.s32.totalorder %s1132_s25, %s1128_s24  ;;  %p1482_p1 = scmp.eq.s32.totalorder %s1234_s30, 0 }
  0x10   : > { %p189_p3 = scmp.eq.s32.totalorder %s1484_s8, 1  ;;  %p763_p5 = scmp.ge.s32.totalorder %s1148_s29, 1 }
  0x11   : > { %p1245_p4 = por %p1482_p1, %p63_p0  ;;  %p252_p7 = scmp.lt.s32.totalorder %s1148_s29, 3 }
  0x12   : > { %p1250_p6 = por %p189_p3, %p63_p0  ;;  %s1150_s12 = smov [#allocation5]  }
  0x13   : > { %s1488_s9 = scalar_select %p1245_p4, 1, 0 }
  0x14   : > { %s1489_s10 = scalar_select %p1250_p6, 1, 0 }
  0x15   : > { %p1255_p8 = pnand %p763_p5, %p252_p7  ;;  %s264_s13 = sshll.u32 %s1150_s12, 4  ;;  %s265_s13 = int_to_ptr.vmem [resolvable:$true] %s264_s13 }
  0x16   : > { %s1151_s15 = smov [#allocation7]   ;;  %s1152_s17 = smov [#allocation8]  }
  0x17   : > { %p807_p9 = pneg %p1255_p8  ;;  %s283_s16 = sshll.u32 %s1151_s15, 4  ;;  %s284_s16 = int_to_ptr.vmem [resolvable:$true] %s283_s16 }
  0x18   : > { %s296_s18 = sshll.u32 %s1152_s17, 4  ;;  %s909_s19 = scalar_lea.vmem %s265_s13, 1024  ;;  %s297_s18 = int_to_ptr.vmem [resolvable:$true] %s296_s18 }
  0x19   : > { %p1264_p11 = pnand %p807_p9, %p1482_p1  ;;  %p910_p13 = scmp.ne.s32.totalorder %s265_s13, %s909_s19 }
  0x1a   : > { %p917_p5 = scmp.lt.s32.totalorder %s265_s13, %s265_s13  ;;  %p918_p7 = scmp.lt.s32.totalorder %s909_s19, %s909_s19 }
  0x1b   : > { %p900_p12 = pneg %p1264_p11 }
  0x1c   : > { %p919_p9 = por %p918_p7, %p917_p5 }
  0x1d   : > { %p912_p0 = pnand %p910_p13, %p900_p12 }
  0x1f   : > { %p913_p3 = pneg %p912_p0 }
  0x21   : > { %p920_p10 = pnand %p919_p9, %p913_p3 }
  0x23   : > { %923 = shalt.err (!%p920_p10)
}
  0x24   : > { %s1153_s20 = smov 256   ;;  %s1154_s21 = smov 16  }
  0x25   : > { %s1492_s1 = sld [smem:[#allocation19_spill]]  ;;  %s935_s12 = scalar_lea.vmem %s284_s16, 128 }
  0x26   : > { %p936_p1 = scmp.ne.s32.totalorder %s284_s16, %s935_s12  ;;  %p943_p2 = scmp.lt.s32.totalorder %s284_s16, %s284_s16 }
  0x27   : > { %p944_p6 = scmp.lt.s32.totalorder %s935_s12, %s935_s12 }
  0x28   : > { %p938_p13 = pnand %p936_p1, %p900_p12 }
  0x29   : > { %p945_p5 = por %p944_p6, %p943_p2 }
  0x2a   : > { %p939_p0 = pneg %p938_p13 }
  0x2b   : > { %810 = dma.hbm_to_vmem [thread:$0]  (!%p1264_p11), %s1492_s1, 1024, %s265_s13, [#allocation6], %s1153_s20, %s1153_s20, %s1154_s21  }
  0x2c   : > { %p946_p3 = pnand %p945_p5, %p939_p0 }
  0x2e   : > { %949 = shalt.err (!%p946_p3)
}
  0x2f   : > { %s1493_s3 = sld [smem:[#allocation20_spill]]  ;;  %s961_s13 = scalar_lea.vmem %s297_s18, 128 }
  0x30   : > { %p962_p10 = scmp.ne.s32.totalorder %s297_s18, %s961_s13  ;;  %p969_p9 = scmp.lt.s32.totalorder %s297_s18, %s297_s18 }
  0x31   : > { %p970_p13 = scmp.lt.s32.totalorder %s961_s13, %s961_s13 }
  0x32   : > { %p964_p7 = pnand %p962_p10, %p900_p12 }
  0x33   : > { %p971_p4 = por %p970_p13, %p969_p9 }
  0x34   : > { %p965_p1 = pneg %p964_p7 }
  0x35   : > { %813 = dma.hbm_to_vmem [thread:$0]  (!%p1264_p11), %s1493_s3, 128, %s284_s16, [#allocation6]  }
  0x36   : > { %p972_p2 = pnand %p971_p4, %p965_p1 }
  0x38   : > { %975 = shalt.err (!%p972_p2)
}
  0x39   : > { %s1494_s4 = sld [smem:[#allocation21_spill]]  ;;  %s50_s16 = sadd.s32 1, %s1136_s26 }
  0x3a   : > { %s41_s21 = sadd.s32 1, %s1144_s28  ;;  %p57_p4 = scmp.ne.s32.totalorder %s1136_s26, %s1132_s25 }
  0x3b   : > { %p43_p6 = scmp.ge.s32.totalorder %s41_s21, 2  ;;  %p58_p12 = scmp.eq.s32.totalorder %s1148_s29, 0 }
  0x3c   : > { %p1495_p0 = scmp.eq.s32.totalorder %s1234_s30, 1  ;;  %p834_p3 = scmp.lt.s32.totalorder %s1148_s29, 2 }
  0x3d   : > { %s1512_s21 = smov (%p43_p6, %s41_s21), 0  ;;  %p59_p10 = por %p58_p12, %p57_p4 }
  0x3e   : > { %p1301_p5 = por %p1495_p0, %p57_p4  ;;  %s307_s22 = sand.u32 1, %s1136_s26  }
  0x3f   : > { %816 = dma.hbm_to_vmem [thread:$0]  (!%p1264_p11), %s1494_s4, 128, %s297_s18, [#allocation9]  }
  0x40   : > { %s45_s23 = ssub.s32 %s1144_s28, %s1512_s21  ;;  %s768_s18 = sshll.u32 %s307_s22, 3 }
  0x41   : > { %p48_p7 = scmp.eq.s32.totalorder %s45_s23, 0  ;;  %s769_s12 = sshll.u32 %s1144_s28, 7 }
  0x42   : > { %s317_s19 = scalar_lea.hbm %s1474_s0, %s769_s12  ;;  %s311_s20 = scalar_lea.vmem [#allocation2], %s768_s18 }
  0x43   : > { %s1313_s15 = scalar_select %p48_p7, %s1136_s26, %s50_s16  }
  0x44   : > { %s319_s8 = sshll.u32 %s311_s20, 4  ;;  %p1320_p11 = pnand %p834_p3, %p59_p10  ;;  %s320_s8 = int_to_ptr.vmem [resolvable:$true] %s319_s8 }
  0x45   : > { %s308_s3 = scalar_lea.sflag [#allocation3], %s307_s22  ;;  %s989_s23 = scalar_lea.vmem %s320_s8, 128 }
  0x46   : > { %p978_p1 = pneg %p1320_p11  ;;  %p990_p9 = scmp.ne.s32.totalorder %s320_s8, %s989_s23 }
  0x47   : > { %s1155_s16 = smov [#allocation2]  }
  0x48   : > { %p992_p13 = pnand %p990_p9, %p978_p1  ;;  %s994_s4 = sshll.u32 %s1155_s16, 4  ;;  %s995_s4 = int_to_ptr.vmem [resolvable:$false] %s994_s4 }
  0x49   : > { %s996_s12 = scalar_lea.vmem %s995_s4, 256  ;;  %p997_p4 = scmp.lt.s32.totalorder %s320_s8, %s995_s4 }
  0x4a   : > { %p993_p2 = pneg %p992_p13  ;;  %p998_p6 = scmp.lt.s32.totalorder %s996_s12, %s989_s23 }
  0x4c   : > { %p999_p12 = por %p998_p6, %p997_p4 }
  0x4e   : > { %p1000_p0 = pnand %p999_p12, %p993_p2 }
  0x50   : > { %1003 = shalt.err (!%p1000_p0)
}
  0x51   : > { %820 = dma.hbm_to_vmem [thread:$0]  (!%p1320_p11), %s317_s19, 128, %s320_s8, %s308_s3  }
  0x52   : > { %328 = sbr.rel (%p1255_p8) target bundleno = 876 (0x36c), region = 40  ;;  %s1331_s22 = sand.u32 (!%p1255_p8), 1, %s1132_s25  }
  0x53   : > { %s1334_s18 = sshll.u32 (!%p1255_p8), %s1331_s22, 3  ;;  %s331_s4 = scalar_lea.sflag (!%p1255_p8), [#allocation3], %s1331_s22 }
  0x54   : > { %s334_s17 = scalar_lea.vmem (!%p1255_p8), [#allocation2], %s1334_s18  ;;  %p1498_p3 = scmp.ne.s32.totalorder (!%p1255_p8), %s1488_s9, 0 }
  0x57   : > { %1107 = dma.done.wait (%p1498_p3), %s331_s4, 128  }
  0x58   : > { %1109 = vsyncadd (%p1498_p3), %s331_s4, 4294967168  ;;  %p1499_p10 = scmp.eq.s32.totalorder %s1234_s30, 0 }
  0x5a   : > { %1111 = dma.done.wait (%p1499_p10), [#allocation6], 1152   ;;  %p1500_p8 = pmov %p1499_p10 }
  0x5c   : > { %1113 = vsyncadd (%p1500_p8), [#allocation6], 4294966144  ;;  %p1501_p7 = pmov %p1500_p8 }
  0x5e   : > { %1115 = dma.done.wait (%p1501_p7), [#allocation9], 128   ;;  %p1502_p11 = pmov %p1501_p7 }
  0x5f   : > { %vm388_vm0 = vcmask 261120   ;;  %v387_v0 = vld [vmem:[%s334_s17] sm:$0xff]  ;;  %v408_v9 = vld [vmem:[#allocation5 + $0x28] sm:$0xff]  ;;  %v407_v10 = vld [vmem:[#allocation5 + $0x20] sm:$0xff]  ;;  %v1156_v11 = vmov 0.0   ;;  %s1157_s1 = smov 32   ;;  %v413_v23 = vlaneseq }
  0x60   : > { %1117 = vsyncadd (%p1502_p11), [#allocation9], 4294967168  ;;  %v389_v1 = vsel %vm388_vm0, %v387_v0, 0.0  ;;  %v410_v7 = vld [vmem:[#allocation5 + $0x38] sm:$0xff]  ;;  %v409_v8 = vld [vmem:[#allocation5 + $0x30] sm:$0xff]  ;;  %490 = vmatprep.mubr.f32.mxu0 %v1156_v11  ;;  %s1158_s3 = smov 96  }
  0x61   : > { %390 = vadd.xlane.f32.xlu0 %v389_v1  ;;  %450 = vmatprep.subr.mxu0 %v410_v7  ;;  %v406_v12 = vld [vmem:[#allocation5 + $0x18] sm:$0xff]  ;;  %v405_v13 = vld [vmem:[#allocation5 + $0x10] sm:$0xff]  ;;  %v404_v14 = vld [vmem:[#allocation5 + $0x8] sm:$0xff]  ;;  %v414_v24 = vshrl.u32 %v413_v23, 7  ;;  %s1358_s11 = sshll.u32 %s1140_s27, 7  ;;  %s372_s13 = scalar_lea.vmem [#allocation10], %s1334_s18 }
  0x62   : > { %451 = vmatpush1.msra.mxu0 %v409_v8  ;;  %v403_v15 = vld [vmem:[#allocation5] sm:$0xff]  ;;  %v498_v17 = vld [vmem:[#allocation8] sm:$0xff]  ;;  %v411_v27 = vld [vmem:[%s1476_s2] sm:$0x3]  ;;  %s557_s19 = sshll.u32 %s372_s13, 4  ;;  %s1365_s16 = scalar_lea.hbm %s1479_s5, %s1358_s11  ;;  %s1367_s19 = int_to_ptr.vmem [resolvable:$true] %s557_s19 }
  0x63   : > { %452 = vmatprep.subr.mxu0 %v408_v9  ;;  %v497_v16 = vld [vmem:[#allocation7] sm:$0xff]  ;;  %v415_v25 = vsub.s32 0, %v414_v24  ;;  %v419_v28 = vsub.s32 1, %v414_v24  ;;  %s533_s27 = scalar_lea.sflag [#allocation4], %s1331_s22  ;;  %s1004_s12 = scalar_lea.vmem %s1367_s19, 128 }
  0x64   : > { %453 = vmatpush1.msra.mxu0 %v407_v10  ;;  %511 = vrot.lane.b32.xlu1 %v497_v16, %s1157_s1  ;;  %p1005_p1 = scmp.ne.s32.totalorder %s1367_s19, %s1004_s12  ;;  %s1159_s4 = smov [#allocation10]  }
  0x65   : > { %454 = vmatprep.subr.mxu0 %v406_v12  ;;  %v416_v29 = vrot.slane %v411_v27, %v415_v25  ;;  %v420_v30 = vrot.slane %v411_v27, %v419_v28  ;;  %s1008_s17 = sshll.u32 %s1159_s4, 4  ;;  %s1009_s17 = int_to_ptr.vmem [resolvable:$false] %s1008_s17 }
  0x66   : > { %455 = vmatpush1.msra.mxu0 %v405_v13  ;;  %p1006_p9 = pnand %p1005_p1, %p1301_p5  ;;  %p1011_p2 = scmp.lt.s32.totalorder %s1367_s19, %s1009_s17 }
  0x67   : > { %456 = vmatprep.subr.mxu0 %v404_v14 }
  0x68   : > { %457 = vmatpush1.msra.mxu0 %v403_v15  ;;  %501 = vrot.lane.b32.xlu1 %v498_v17, %s1158_s3  ;;  %p1007_p13 = pneg %p1006_p9 }
  0xd6   : > { %v512_v26 = vpop.permute.xlu1 %511 }
  0xda   : > { %v502_v32 = vpop.permute.xlu1 %501 }
  0xea   : > { %v391_v2 = vpop.xlane.xlu0 %390 }
  0xeb   : > { %v393_v3 = vmul.f32 0.03125, %v391_v2 }
  0xed   : > { %v394_v4 = vsub.f32 %v387_v0, %v393_v3 }
  0xef   : > { %v395_v5 = vmul.f32 %v394_v4, %v394_v4 }
  0xf1   : > { %v396_v6 = vsel %vm388_vm0, %v395_v5, 0.0 }
  0xf2   : > { %397 = vadd.xlane.f32.xlu0 %v396_v6 }
 0x17b   : > { %v398_v18 = vpop.xlane.xlu0 %397 }
 0x17c   : > { %v399_v19 = vmul.f32 0.03125, %v398_v18 }
 0x17e   : > { %v400_v20 = vadd.f32 1e-05, %v399_v19 }
 0x180   : > { %896 = vrsqrt.f32 %v400_v20 }
 0x18d   : > { %v897_v21 = vpop.eup %896 }
 0x18e   : > { %v402_v22 = vmul.f32 %v897_v21, %v394_v4 }
 0x190   : > { %778 = vmatmul.mubr.msk.f32.vlgmr.msra.gmra.mxu0 %vm388_vm0, %v402_v22 }
 0x250   : > { %v492_v31 = vpop.f32.mrf.mxu0 }
 0x251   : > { %v493_v33 = vadd.f32 %v492_v31, %v416_v29 }
 0x252   : > { %v494_v34 = vpop.f32.mrf.mxu0 }
 0x253   : > { %v504_v35 = vmul.f32 %v502_v32, %v493_v33  ;;  %v495_v36 = vadd.f32 %v494_v34, %v420_v30  ;;  %v499_v38 = vmul.f32 %v497_v16, %v493_v33  ;;  %v514_v41 = vmul.f32 %v512_v26, %v493_v33 }
 0x255   : > { %v515_v37 = vmul.f32 %v498_v17, %v495_v36  ;;  %506 = vrot.lane.b32.xlu1 %v504_v35, %s1157_s1 }
 0x257   : > { %517 = vrot.lane.b32.xlu0 %v515_v37, %s1157_s1  ;;  %s1010_s1 = scalar_lea.vmem %s1009_s17, 256 }
 0x258   : > { %p1012_p4 = scmp.lt.s32.totalorder %s1010_s1, %s1004_s12 }
 0x25a   : > { %p1013_p6 = por %p1012_p4, %p1011_p2 }
 0x25c   : > { %p1014_p12 = pnand %p1013_p6, %p1007_p13 }
 0x2c7   : > { %v507_v39 = vpop.permute.xlu1 %506 }
 0x2c8   : > { %v509_v40 = vadd.f32 %v507_v39, %v499_v38 }
 0x2c9   : > { %v518_v42 = vpop.permute.xlu0 %517 }
 0x2ca   : > { %v520_v43 = vadd.f32 %v518_v42, %v514_v41  ;;  %521 = vst.msk [vmem:[%s372_s13] sm:$0xff] %vm388_vm0, %v509_v40 }
 0x2cb   : > { %1017 = shalt.err (!%p1014_p12)
}
 0x2cc   : > { %s1018_s8 = scalar_lea.hbm %s1365_s16, 128  ;;  %s1022_s13 = scalar_lea.hbm %s1479_s5, 256 }
 0x2cd   : > { %p1019_p0 = scmp.ne.s32.totalorder %s1365_s16, %s1018_s8  ;;  %p1023_p8 = scmp.lt.s32.totalorder %s1365_s16, %s1479_s5 }
 0x2ce   : > { %p1024_p7 = scmp.lt.s32.totalorder %s1022_s13, %s1018_s8 }
 0x2cf   : > { %p1020_p3 = pnand %p1019_p0, %p1301_p5 }
 0x2d0   : > { %p1025_p11 = por %p1024_p7, %p1023_p8 }
 0x2d1   : > { %p1021_p10 = pneg %p1020_p3 }
 0x2d3   : > { %p1026_p1 = pnand %p1025_p11, %p1021_p10 }
 0x2d5   : > { %1029 = shalt.err (!%p1026_p1)
}
 0x2d6   : > { %801 = dma.vmem_to_hbm [thread:$0]  (%p1301_p5), %s1367_s19, 128, %s1365_s16, %s533_s27   ;;  %523 = vrot.lane.b32.xlu1 %v520_v43, %s1158_s3 }
 0x2d7   : > { %s1160_s12 = smov 64   ;;  %s537_s4 = sand.u32 1, %s1234_s30  }
 0x2d8   : > { %s379_s17 = scalar_lea.vmem [#allocation11], %s1334_s18  ;;  %s1398_s9 = scalar_lea.hbm %s1480_s6, %s1358_s11 }
 0x2d9   : > { %s571_s1 = sshll.u32 %s379_s17, 4  ;;  %s386_s19 = scalar_lea.vmem [#allocation13], %s1334_s18  ;;  %s1400_s1 = int_to_ptr.vmem [resolvable:$true] %s571_s1 }
 0x2da   : > { %528 = vrot.lane.b32.xlu1 %v493_v33, %s1160_s12  ;;  %s585_s16 = sshll.u32 %s386_s19, 4  ;;  %s1406_s3 = scalar_lea.sflag [#allocation12], %s537_s4  ;;  %s586_s16 = int_to_ptr.vmem [resolvable:$true] %s585_s16 }
 0x2db   : > { %s1030_s30 = scalar_lea.vmem %s1400_s1, 128  ;;  %s1161_s27 = smov [#allocation11]  }
 0x2dc   : > { %p1031_p9 = scmp.ne.s32.totalorder %s1400_s1, %s1030_s30  ;;  %s1034_s13 = sshll.u32 %s1161_s27, 4  ;;  %s1035_s13 = int_to_ptr.vmem [resolvable:$false] %s1034_s13 }
 0x2dd   : > { %s1036_s20 = scalar_lea.vmem %s1035_s13, 256  ;;  %p1037_p4 = scmp.lt.s32.totalorder %s1400_s1, %s1035_s13 }
 0x2de   : > { %p1032_p13 = pnand %p1031_p9, %p1301_p5  ;;  %p1038_p6 = scmp.lt.s32.totalorder %s1036_s20, %s1030_s30 }
 0x2e0   : > { %p1033_p2 = pneg %p1032_p13  ;;  %p1039_p12 = por %p1038_p6, %p1037_p4 }
 0x2e2   : > { %p1040_p0 = pnand %p1039_p12, %p1033_p2 }
 0x348   : > { %v524_v44 = vpop.permute.xlu1 %523 }
 0x349   : > { %526 = vst.msk [vmem:[%s379_s17] sm:$0xff] %vm388_vm0, %v524_v44 }
 0x34a   : > { %1043 = shalt.err (!%p1040_p0)
}
 0x34b   : > { %s1044_s23 = scalar_lea.hbm %s1398_s9, 128  ;;  %s1048_s17 = scalar_lea.hbm %s1480_s6, 256 }
 0x34c   : > { %p1045_p3 = scmp.ne.s32.totalorder %s1398_s9, %s1044_s23  ;;  %p1049_p7 = scmp.lt.s32.totalorder %s1398_s9, %s1480_s6 }
 0x34d   : > { %p1050_p11 = scmp.lt.s32.totalorder %s1048_s17, %s1044_s23 }
 0x34e   : > { %p1046_p10 = pnand %p1045_p3, %p1301_p5 }
 0x34f   : > { %p1051_p1 = por %p1050_p11, %p1049_p7 }
 0x350   : > { %p1047_p8 = pneg %p1046_p10 }
 0x352   : > { %p1052_p9 = pnand %p1051_p1, %p1047_p8 }
 0x354   : > { %1055 = shalt.err (!%p1052_p9)
}
 0x355   : > { %802 = dma.vmem_to_hbm [thread:$0]  (%p1301_p5), %s1400_s1, 128, %s1398_s9, %s1406_s3   ;;  %v529_v45 = vpop.permute.xlu1 %528 }
 0x356   : > { %s583_s13 = scalar_lea.hbm %s1481_s7, %s1358_s11  ;;  %531 = vst.msk [vmem:[%s386_s19] sm:$0xff] %vm388_vm0, %v529_v45  ;;  %s1056_s20 = scalar_lea.vmem %s586_s16, 128 }
 0x357   : > { %p1057_p13 = scmp.ne.s32.totalorder %s586_s16, %s1056_s20  ;;  %s1162_s23 = smov [#allocation13]  }
 0x358   : > { %s1060_s12 = sshll.u32 %s1162_s23, 4  ;;  %s1061_s12 = int_to_ptr.vmem [resolvable:$false] %s1060_s12 }
 0x359   : > { %p1058_p2 = pnand %p1057_p13, %p1301_p5  ;;  %s1062_s4 = scalar_lea.vmem %s1061_s12, 256 }
 0x35a   : > { %p1063_p6 = scmp.lt.s32.totalorder %s586_s16, %s1061_s12  ;;  %p1064_p12 = scmp.lt.s32.totalorder %s1062_s4, %s1056_s20 }
 0x35b   : > { %p1059_p4 = pneg %p1058_p2 }
 0x35c   : > { %p1065_p0 = por %p1064_p12, %p1063_p6 }
 0x35e   : > { %p1066_p3 = pnand %p1065_p0, %p1059_p4 }
 0x360   : > { %1069 = shalt.err (!%p1066_p3)
}
 0x361   : > { %s1070_s11 = scalar_lea.hbm %s583_s13, 128  ;;  %s1074_s9 = scalar_lea.hbm %s1481_s7, 256 }
 0x362   : > { %p1071_p10 = scmp.ne.s32.totalorder %s583_s13, %s1070_s11  ;;  %p1075_p11 = scmp.lt.s32.totalorder %s583_s13, %s1481_s7 }
 0x363   : > { %p1076_p1 = scmp.lt.s32.totalorder %s1074_s9, %s1070_s11 }
 0x364   : > { %p1072_p8 = pnand %p1071_p10, %p1301_p5 }
 0x365   : > { %p1077_p9 = por %p1076_p1, %p1075_p11 }
 0x366   : > { %p1073_p7 = pneg %p1072_p8 }
 0x368   : > { %p1078_p13 = pnand %p1077_p9, %p1073_p7 }
 0x36a   : > { %1081 = shalt.err (!%p1078_p13)
}
 0x36b   : > { %803 = dma.vmem_to_hbm [thread:$0]  (%p1301_p5), %s586_s16, 128, %s583_s13, %s1406_s3  }
 0x36c PF: > { %s597_s8 = sand.u32 1, %s1128_s24   ;;  %p1503_p2 = scmp.ne.s32.totalorder %s1489_s10, 0 }
 0x36d   : > { %p1504_p4 = scmp.ge.s32.totalorder %s1148_s29, 2  ;;  %s598_s22 = scalar_lea.sflag [#allocation4], %s597_s8 }
 0x36f   : > { %p822_p6 = pnand %p1504_p4, %p1503_p2 }
 0x371   : > { %p823_p12 = pneg %p822_p6 }
 0x373   : > { %1119 = dma.done.wait (%p823_p12), %s598_s22, 128  }
 0x374   : > { %1121 = vsyncadd (%p823_p12), %s598_s22, 4294967168  ;;  %s1505_s30 = sadd.s32 4294967294, %s1148_s29  }
 0x375   : > { %s606_s27 = sand.u32 1, %s1505_s30  }
 0x376   : > { %s607_s20 = scalar_lea.sflag [#allocation12], %s606_s27 }
 0x377   : > { %1123 = dma.done.wait (%p823_p12), %s607_s20, 256  }
 0x378   : > { %1125 = vsyncadd (%p823_p12), %s607_s20, 4294967040  ;;  %s29_s29 = sadd.s32 1, %s1148_s29   ;;  %s1506_s24 = smov %s1132_s25 }
 0x379   : > { %p26_p5 = scmp.ge.s32.totalorder %s29_s29, 4   ;;  %s1507_s25 = smov %s1136_s26 }
 0x37a   : > { %s1508_s26 = smov %s1313_s15  ;;  %s1509_s27 = smov %s1144_s28 }
 0x37b   : > { %s1510_s28 = smov %s1512_s21  ;;  %28 = sbr.rel (!%p26_p5) target bundleno = 14 (0xe), region = 131 }
 0x380   :  { %621 = vsyncpa [#allocation3], 1 }
 0x381   :  { %623 = vsyncpa [#allocation3 + $0x1], 1 }
 0x382   :  { %624 = vsyncpa [#allocation6], 1 }
 0x383   :  { %625 = vsyncpa [#allocation9], 1 }
 0x384   :  { %626 = vsyncpa [#allocation4], 1 }
 0x385   :  { %628 = vsyncpa [#allocation4 + $0x1], 1 }
 0x386   :  { %629 = vsyncpa [#allocation12], 1 }
 0x387   :  { %631 = vsyncpa [#allocation12 + $0x1], 1 }

</bundles_post_ra>
